<compile_context>
chip_gen: v5e
topology: v5e:2x2
jax: 0.10.0
libtpu: 0.0.40
codegen_flags: <defaults>
</compile_context>

<pallas_src>
import jax
import jax.numpy as jnp
from jax.experimental import pallas as pl
from jax.experimental.pallas import tpu as pltpu

PAD_IDX = 0
SOS_IDX = 1
EOS_IDX = 2
NEG = -10000.0


def _log_sum_exp(x):
    # identical to the torch helper: m + log(sum(exp(x - m), -1))
    m = jnp.max(x, axis=-1)
    return m + jnp.log(jnp.sum(jnp.exp(x - m[..., None]), axis=-1))


def crf_fwd_kernel(maxlen_ref, h_ref, len_ref, et_ref, tmax_ref, teos_ref,
                   out_ref, u_ref, m_ref):
    """Grid = (batch blocks, time chunks); score carried as (u, m) in VMEM.

    maxlen_ref: (1,)   int32 scalar-prefetch, max sequence length in the batch
    h_ref     : (Bb, s_chunk, Tp) emissions for this (batch block, time chunk)
    len_ref   : (Bb, 1) int32 sequence lengths
    et_ref    : (Tp, Tp) f32, et[j, i] = exp(trans[i, j] - tmax[i])
    tmax_ref  : (1, Tp) f32, tmax[i] = max_j trans[i, j]
    teos_ref  : (1, Tp) f32, trans[EOS, :] (log domain)
    out_ref   : (Bb, 1) f32 partition function
    u_ref     : (Bb, Tp) f32 scratch, u = score - m   (max(u) stays small)
    m_ref     : (Bb, 1) f32 scratch, accumulated shift
    """
    c = pl.program_id(1)
    n_chunks = pl.num_programs(1)
    Bb, Tp = u_ref.shape
    s_chunk = h_ref.shape[1]

    @pl.when(c == 0)
    def _():
        col = jax.lax.broadcasted_iota(jnp.int32, (Bb, Tp), 1)
        u_ref[...] = jnp.where(col == SOS_IDX, 0.0, NEG).astype(jnp.float32)
        m_ref[...] = jnp.zeros_like(m_ref)

    t0 = c * s_chunk
    max_len = maxlen_ref[0]

    @pl.when(t0 < max_len)          # skip compute on fully-padded chunks
    def _():
        tmax = tmax_ref[...]        # (1, Tp)
        lens = len_ref[...]         # (Bb, 1) int32
        hoist_et = Tp <= 128        # avoid holding a huge RHS in registers
        et = et_ref[...] if hoist_et else None

        def step(i, carry):
            u, m = carry
            emit = h_ref[:, i, :]                              # static slice (unrolled)
            p = jnp.exp(u)                                     # shift already known
            du = jnp.max(u, axis=-1, keepdims=True)            # XLU, off the chain
            rhs = et if hoist_et else et_ref[...]
            s = jnp.dot(p, rhs, preferred_element_type=jnp.float32)  # (Bb, Tp) on MXU
            s = jnp.maximum(s, 1e-35)                          # no -inf from underflow
            u_new = emit + tmax + jnp.log(s) - du              # = score_new - (m + du)
            m_new = m + du
            keep = (t0 + i) < lens                             # (Bb, 1) bool
            return jnp.where(keep, u_new, u), jnp.where(keep, m_new, m)

        u, m = jax.lax.fori_loop(0, s_chunk, step, (u_ref[...], m_ref[...]),
                                 unroll=True)
        u_ref[...] = u
        m_ref[...] = m

    @pl.when(c == n_chunks - 1)
    def _():
        x = u_ref[...] + teos_ref[...]                         # (Bb, Tp)
        mm = jnp.max(x, axis=-1, keepdims=True)
        out_ref[...] = m_ref[...] + mm + jnp.log(
            jnp.sum(jnp.exp(x - mm), axis=-1, keepdims=True))


def crf_forward(h, mask, trans, *, s_chunk=64, b_blk=256):
    """h: (B, S, T) f32, mask: (B, S) 0/1 prefix mask, trans: (T, T) f32."""
    B, S, T = h.shape
    h = h.astype(jnp.float32)
    trans = trans.astype(jnp.float32)

    # Tag axis: keep un-padded whenever it fits a lane tile (T <= 128).
    Tp = T if T <= 128 else ((T + 127) // 128) * 128
    if Tp != T:
        trans_p = jnp.full((Tp, Tp), NEG, jnp.float32).at[:T, :T].set(trans)
        h = jnp.pad(h, ((0, 0), (0, 0), (0, Tp - T)))
    else:
        trans_p = trans

    tmax = jnp.max(trans_p, axis=1, keepdims=True)          # (Tp, 1)
    et = jnp.exp(trans_p - tmax).T                          # (Tp, Tp): et[j,i]=exp(tr[i,j]-tmax[i])
    tmax_row = tmax.T                                       # (1, Tp)
    teos = trans_p[EOS_IDX][None, :]                        # (1, Tp)

    # Time chunking: only pad (copy) h when S is not divisible by the chunk.
    s_chunk = max(1, min(s_chunk, S))
    if s_chunk < S and s_chunk % 8:
        s_chunk = min(S, ((s_chunk + 7) // 8) * 8)
    Sp = -(-S // s_chunk) * s_chunk
    if Sp != S:
        h = jnp.pad(h, ((0, 0), (0, Sp - S), (0, 0)))
    n_chunks = Sp // s_chunk

    # Batch blocking: parallel grid axis (useful on v7x's 2 TensorCores).
    b_blk = max(1, min(b_blk, B))
    if b_blk < B and b_blk % 8:
        b_blk = min(B, ((b_blk + 7) // 8) * 8)
    Bp = -(-B // b_blk) * b_blk

    # Prefix-mask lengths (padding mask assumption, as in the module's usage).
    lens = jnp.sum(mask, axis=1).astype(jnp.int32)[:, None]     # (B, 1)
    if Bp != B:
        h = jnp.pad(h, ((0, Bp - B), (0, 0), (0, 0)))
        lens = jnp.pad(lens, ((0, Bp - B), (0, 0)))             # padded rows: len 0
    nb = Bp // b_blk

    max_len = jnp.max(lens).reshape((1,)).astype(jnp.int32)

    out = pl.pallas_call(
        crf_fwd_kernel,
        out_shape=jax.ShapeDtypeStruct((Bp, 1), jnp.float32),
        grid_spec=pltpu.PrefetchScalarGridSpec(
            num_scalar_prefetch=1,
            grid=(nb, n_chunks),
            in_specs=[
                pl.BlockSpec((b_blk, s_chunk, Tp), lambda b, c, ml: (b, c, 0)),  # h
                pl.BlockSpec((b_blk, 1), lambda b, c, ml: (b, 0)),               # lengths
                pl.BlockSpec((Tp, Tp), lambda b, c, ml: (0, 0)),                 # exp(trans - tmax).T
                pl.BlockSpec((1, Tp), lambda b, c, ml: (0, 0)),                  # tmax row
                pl.BlockSpec((1, Tp), lambda b, c, ml: (0, 0)),                  # trans[EOS]
            ],
            out_specs=pl.BlockSpec((b_blk, 1), lambda b, c, ml: (b, 0)),
            scratch_shapes=[
                pltpu.VMEM((b_blk, Tp), jnp.float32),   # u = score - m
                pltpu.VMEM((b_blk, 1), jnp.float32),    # m
            ],
        ),
        compiler_params=pltpu.CompilerParams(
            dimension_semantics=("parallel", "arbitrary"),
        ),
    )(max_len, h, lens, et, tmax_row, teos)
    return out[:B, 0]


def crf_forward_ref(h, mask, trans):
    """Pure-JAX reference replicating the PyTorch loop exactly (log domain)."""
    B, S, T = h.shape
    score = jnp.full((B, T), NEG, jnp.float32).at[:, SOS_IDX].set(0.0)
    for t in range(S):
        mask_t = mask[:, t][:, None]
        x = score[:, None, :] + h[:, t][:, :, None] + trans[None, :, :]
        score_t = _log_sum_exp(x)
        score = score_t * mask_t + score * (1.0 - mask_t)
    return _log_sum_exp(score + trans[EOS_IDX][None, :])


def make_trans(key, num_tags):
    trans = jax.random.normal(key, (num_tags, num_tags), dtype=jnp.float32)
    trans = trans.at[SOS_IDX, :].set(NEG)
    trans = trans.at[:, EOS_IDX].set(NEG)
    trans = trans.at[:, PAD_IDX].set(NEG)
    trans = trans.at[PAD_IDX, :].set(NEG)
    trans = trans.at[PAD_IDX, EOS_IDX].set(0.0)
    trans = trans.at[PAD_IDX, PAD_IDX].set(0.0)
    return trans


if __name__ == "__main__":
    B, S, T = 4, 8, 16  # batch, seq_len, num_tags

    key = jax.random.PRNGKey(0)
    k_trans, k_h = jax.random.split(key)

    trans = make_trans(k_trans, T)
    h = jax.random.normal(k_h, (B, S, T), dtype=jnp.float32)

    # deterministic variable-length prefix mask (like padded sequences)
    lengths = jnp.array([S, S - 2, S - 3, 5], dtype=jnp.int32)
    mask = (jnp.arange(S)[None, :] < lengths[:, None]).astype(jnp.float32)

    out = crf_forward(h, mask, trans)
    jax.block_until_ready(out)

    ref = crf_forward_ref(h, mask, trans)
    assert out.shape == (B,)
    assert jnp.allclose(out, ref, atol=1e-3, rtol=1e-3), (out, ref)

    print("KERNEL_OK")
</pallas_src>

<mosaic_0001>
module attributes {stable_mosaic.version = 11 : i64} {
  func.func @crf_fwd_kernel(%arg0: i32, %arg1: i32, %arg2: memref<1xi32, #tpu.memory_space<smem>>, %arg3: memref<4x8x16xf32, #tpu.memory_space<vmem>>, %arg4: memref<4x1xi32, #tpu.memory_space<vmem>>, %arg5: memref<16x16xf32, #tpu.memory_space<vmem>>, %arg6: memref<1x16xf32, #tpu.memory_space<vmem>>, %arg7: memref<1x16xf32, #tpu.memory_space<vmem>>, %arg8: memref<4x1xf32, #tpu.memory_space<vmem>>, %arg9: memref<4x16xf32, #tpu.memory_space<vmem>>, %arg10: memref<4x1xf32, #tpu.memory_space<vmem>>) attributes {dimension_semantics = [#tpu.dimension_semantics<parallel>, #tpu.dimension_semantics<arbitrary>], iteration_bounds = array<i64: 1, 1>, scalar_prefetch = 1 : i64, scratch_operands = 2 : i64, tpu.core_type = #tpu.core_type<tc>, window_params = [{transform_indices = @transform_0, window_bounds = array<i64: 4, 8, 16>}, {transform_indices = @transform_1, window_bounds = array<i64: 4, 1>}, {pipeline_mode = #tpu.pipeline_mode<synchronous>, transform_indices = @transform_2, window_bounds = array<i64: 16, 16>}, {pipeline_mode = #tpu.pipeline_mode<synchronous>, transform_indices = @transform_3, window_bounds = array<i64: 1, 16>}, {pipeline_mode = #tpu.pipeline_mode<synchronous>, transform_indices = @transform_4, window_bounds = array<i64: 1, 16>}, {transform_indices = @transform_5, window_bounds = array<i64: 4, 1>}]} {
    %c0_i32 = arith.constant 0 : i32
    %0 = arith.cmpi eq, %arg1, %c0_i32 : i32
    %1 = arith.extui %0 : i1 to i32
    %c0_i32_0 = arith.constant 0 : i32
    %2 = arith.cmpi ne, %1, %c0_i32_0 : i32
    scf.if %2 {
      %11 = tpu.iota {dimensions = array<i32: 1>} : vector<4x16xi32>
      %c1_i32 = arith.constant 1 : i32
      %12 = vector.broadcast %c1_i32 : i32 to vector<4x16xi32>
      %13 = arith.cmpi eq, %11, %12 : vector<4x16xi32>
      %cst = arith.constant 0.000000e+00 : f32
      %cst_4 = arith.constant -1.000000e+04 : f32
      %14 = vector.broadcast %cst : f32 to vector<4x16xf32>
      %15 = vector.broadcast %cst_4 : f32 to vector<4x16xf32>
      %16 = arith.select %13, %14, %15 : vector<4x16xi1>, vector<4x16xf32>
      %c0_5 = arith.constant 0 : index
      %c0_6 = arith.constant 0 : index
      %17 = vector.load %arg9[%c0_5, %c0_6] : memref<4x16xf32, #tpu.memory_space<vmem>>, vector<4x16xf32>
      tpu.vector_store %arg9[%c0_5, %c0_6], %16 {strides = array<i32>} : memref<4x16xf32, #tpu.memory_space<vmem>>, vector<4x16xf32>,
      %cst_7 = arith.constant 0.000000e+00 : f32
      %18 = vector.broadcast %cst_7 : f32 to vector<4x1xf32>
      %c0_8 = arith.constant 0 : index
      %c0_9 = arith.constant 0 : index
      %19 = vector.load %arg10[%c0_8, %c0_9] : memref<4x1xf32, #tpu.memory_space<vmem>>, vector<4x1xf32>
      tpu.vector_store %arg10[%c0_8, %c0_9], %18 {strides = array<i32>} : memref<4x1xf32, #tpu.memory_space<vmem>>, vector<4x1xf32>,
    } else {
    }
    %c8_i32 = arith.constant 8 : i32
    %3 = arith.muli %arg1, %c8_i32 : i32
    %c0 = arith.constant 0 : index
    %4 = memref.load %arg2[%c0] : memref<1xi32, #tpu.memory_space<smem>>
    %5 = arith.cmpi slt, %3, %4 : i32
    %6 = arith.extui %5 : i1 to i32
    %c0_i32_1 = arith.constant 0 : i32
    %7 = arith.cmpi ne, %6, %c0_i32_1 : i32
    scf.if %7 {
      %c0_4 = arith.constant 0 : index
      %c0_5 = arith.constant 0 : index
      %11 = vector.load %arg6[%c0_4, %c0_5] : memref<1x16xf32, #tpu.memory_space<vmem>>, vector<1x16xf32>
      %c0_6 = arith.constant 0 : index
      %c0_7 = arith.constant 0 : index
      %12 = vector.load %arg4[%c0_6, %c0_7] : memref<4x1xi32, #tpu.memory_space<vmem>>, vector<4x1xi32>
      %c0_8 = arith.constant 0 : index
      %c0_9 = arith.constant 0 : index
      %13 = vector.load %arg5[%c0_8, %c0_9] : memref<16x16xf32, #tpu.memory_space<vmem>>, vector<16x16xf32>
      %c0_10 = arith.constant 0 : index
      %c0_11 = arith.constant 0 : index
      %14 = vector.load %arg9[%c0_10, %c0_11] : memref<4x16xf32, #tpu.memory_space<vmem>>, vector<4x16xf32>
      %c0_12 = arith.constant 0 : index
      %c0_13 = arith.constant 0 : index
      %15 = vector.load %arg10[%c0_12, %c0_13] : memref<4x1xf32, #tpu.memory_space<vmem>>, vector<4x1xf32>
      %c0_i32_14 = arith.constant 0 : i32
      %c0_15 = arith.constant 0 : index
      %16 = arith.index_cast %c0_i32_14 : i32 to index
      %c0_16 = arith.constant 0 : index
      %17 = vector.load %arg3[%c0_15, %16, %c0_16] : memref<4x8x16xf32, #tpu.memory_space<vmem>>, vector<4x1x16xf32>
      %18 = vector.shape_cast %17 : vector<4x1x16xf32> to vector<4x16xf32>
      %19 = math.exp %14 : vector<4x16xf32>
      %cst = arith.constant dense<0xFF800000> : vector<4xf32>
      %20 = vector.multi_reduction <maximumf>, %14, %cst [1] : vector<4x16xf32> to vector<4xf32>
      %21 = vector.shape_cast %20 : vector<4xf32> to vector<4x1xf32>
      %cst_17 = arith.constant dense<0.000000e+00> : vector<4x16xf32>
      %22 = tpu.matmul %19, %13, %cst_17 {dimension_numbers = #tpu.dot_dimension_numbers<[1], [0], [0], [1], [0, 0, 1, 1], [], []>} : vector<4x16xf32>, vector<16x16xf32>, vector<4x16xf32> -> vector<4x16xf32>
      %cst_18 = arith.constant 1.000000e-35 : f32
      %23 = vector.broadcast %cst_18 : f32 to vector<4x16xf32>
      %24 = arith.maximumf %22, %23 : vector<4x16xf32>
      %25 = vector.broadcast %11 : vector<1x16xf32> to vector<4x16xf32>
      %26 = arith.addf %18, %25 : vector<4x16xf32>
      %27 = math.log %24 : vector<4x16xf32>
      %28 = arith.addf %26, %27 : vector<4x16xf32>
      %29 = vector.broadcast %21 : vector<4x1xf32> to vector<4x16xf32>
      %30 = arith.subf %28, %29 : vector<4x16xf32>
      %31 = arith.addf %15, %21 : vector<4x1xf32>
      %32 = arith.addi %3, %c0_i32_14 : i32
      %33 = vector.broadcast %32 : i32 to vector<4x1xi32>
      %34 = arith.cmpi slt, %33, %12 : vector<4x1xi32>
      %35 = vector.shape_cast %34 : vector<4x1xi1> to vector<4x1xi1>
      %36 = vector.broadcast %35 : vector<4x1xi1> to vector<4x16xi1>
      %37 = arith.select %36, %30, %14 : vector<4x16xi1>, vector<4x16xf32>
      %38 = arith.select %34, %31, %15 : vector<4x1xi1>, vector<4x1xf32>
      %c1_i32 = arith.constant 1 : i32
      %c0_19 = arith.constant 0 : index
      %39 = arith.index_cast %c1_i32 : i32 to index
      %c0_20 = arith.constant 0 : index
      %40 = vector.load %arg3[%c0_19, %39, %c0_20] : memref<4x8x16xf32, #tpu.memory_space<vmem>>, vector<4x1x16xf32>
      %41 = vector.shape_cast %40 : vector<4x1x16xf32> to vector<4x16xf32>
      %42 = math.exp %37 : vector<4x16xf32>
      %cst_21 = arith.constant dense<0xFF800000> : vector<4xf32>
      %43 = vector.multi_reduction <maximumf>, %37, %cst_21 [1] : vector<4x16xf32> to vector<4xf32>
      %44 = vector.shape_cast %43 : vector<4xf32> to vector<4x1xf32>
      %cst_22 = arith.constant dense<0.000000e+00> : vector<4x16xf32>
      %45 = tpu.matmul %42, %13, %cst_22 {dimension_numbers = #tpu.dot_dimension_numbers<[1], [0], [0], [1], [0, 0, 1, 1], [], []>} : vector<4x16xf32>, vector<16x16xf32>, vector<4x16xf32> -> vector<4x16xf32>
      %cst_23 = arith.constant 1.000000e-35 : f32
      %46 = vector.broadcast %cst_23 : f32 to vector<4x16xf32>
      %47 = arith.maximumf %45, %46 : vector<4x16xf32>
      %48 = vector.broadcast %11 : vector<1x16xf32> to vector<4x16xf32>
      %49 = arith.addf %41, %48 : vector<4x16xf32>
      %50 = math.log %47 : vector<4x16xf32>
      %51 = arith.addf %49, %50 : vector<4x16xf32>
      %52 = vector.broadcast %44 : vector<4x1xf32> to vector<4x16xf32>
      %53 = arith.subf %51, %52 : vector<4x16xf32>
      %54 = arith.addf %38, %44 : vector<4x1xf32>
      %55 = arith.addi %3, %c1_i32 : i32
      %56 = vector.broadcast %55 : i32 to vector<4x1xi32>
      %57 = arith.cmpi slt, %56, %12 : vector<4x1xi32>
      %58 = vector.shape_cast %57 : vector<4x1xi1> to vector<4x1xi1>
      %59 = vector.broadcast %58 : vector<4x1xi1> to vector<4x16xi1>
      %60 = arith.select %59, %53, %37 : vector<4x16xi1>, vector<4x16xf32>
      %61 = arith.select %57, %54, %38 : vector<4x1xi1>, vector<4x1xf32>
      %c2_i32 = arith.constant 2 : i32
      %c0_24 = arith.constant 0 : index
      %62 = arith.index_cast %c2_i32 : i32 to index
      %c0_25 = arith.constant 0 : index
      %63 = vector.load %arg3[%c0_24, %62, %c0_25] : memref<4x8x16xf32, #tpu.memory_space<vmem>>, vector<4x1x16xf32>
      %64 = vector.shape_cast %63 : vector<4x1x16xf32> to vector<4x16xf32>
      %65 = math.exp %60 : vector<4x16xf32>
      %cst_26 = arith.constant dense<0xFF800000> : vector<4xf32>
      %66 = vector.multi_reduction <maximumf>, %60, %cst_26 [1] : vector<4x16xf32> to vector<4xf32>
      %67 = vector.shape_cast %66 : vector<4xf32> to vector<4x1xf32>
      %cst_27 = arith.constant dense<0.000000e+00> : vector<4x16xf32>
      %68 = tpu.matmul %65, %13, %cst_27 {dimension_numbers = #tpu.dot_dimension_numbers<[1], [0], [0], [1], [0, 0, 1, 1], [], []>} : vector<4x16xf32>, vector<16x16xf32>, vector<4x16xf32> -> vector<4x16xf32>
      %cst_28 = arith.constant 1.000000e-35 : f32
      %69 = vector.broadcast %cst_28 : f32 to vector<4x16xf32>
      %70 = arith.maximumf %68, %69 : vector<4x16xf32>
      %71 = vector.broadcast %11 : vector<1x16xf32> to vector<4x16xf32>
      %72 = arith.addf %64, %71 : vector<4x16xf32>
      %73 = math.log %70 : vector<4x16xf32>
      %74 = arith.addf %72, %73 : vector<4x16xf32>
      %75 = vector.broadcast %67 : vector<4x1xf32> to vector<4x16xf32>
      %76 = arith.subf %74, %75 : vector<4x16xf32>
      %77 = arith.addf %61, %67 : vector<4x1xf32>
      %78 = arith.addi %3, %c2_i32 : i32
      %79 = vector.broadcast %78 : i32 to vector<4x1xi32>
      %80 = arith.cmpi slt, %79, %12 : vector<4x1xi32>
      %81 = vector.shape_cast %80 : vector<4x1xi1> to vector<4x1xi1>
      %82 = vector.broadcast %81 : vector<4x1xi1> to vector<4x16xi1>
      %83 = arith.select %82, %76, %60 : vector<4x16xi1>, vector<4x16xf32>
      %84 = arith.select %80, %77, %61 : vector<4x1xi1>, vector<4x1xf32>
      %c3_i32 = arith.constant 3 : i32
      %c0_29 = arith.constant 0 : index
      %85 = arith.index_cast %c3_i32 : i32 to index
      %c0_30 = arith.constant 0 : index
      %86 = vector.load %arg3[%c0_29, %85, %c0_30] : memref<4x8x16xf32, #tpu.memory_space<vmem>>, vector<4x1x16xf32>
      %87 = vector.shape_cast %86 : vector<4x1x16xf32> to vector<4x16xf32>
      %88 = math.exp %83 : vector<4x16xf32>
      %cst_31 = arith.constant dense<0xFF800000> : vector<4xf32>
      %89 = vector.multi_reduction <maximumf>, %83, %cst_31 [1] : vector<4x16xf32> to vector<4xf32>
      %90 = vector.shape_cast %89 : vector<4xf32> to vector<4x1xf32>
      %cst_32 = arith.constant dense<0.000000e+00> : vector<4x16xf32>
      %91 = tpu.matmul %88, %13, %cst_32 {dimension_numbers = #tpu.dot_dimension_numbers<[1], [0], [0], [1], [0, 0, 1, 1], [], []>} : vector<4x16xf32>, vector<16x16xf32>, vector<4x16xf32> -> vector<4x16xf32>
      %cst_33 = arith.constant 1.000000e-35 : f32
      %92 = vector.broadcast %cst_33 : f32 to vector<4x16xf32>
      %93 = arith.maximumf %91, %92 : vector<4x16xf32>
      %94 = vector.broadcast %11 : vector<1x16xf32> to vector<4x16xf32>
      %95 = arith.addf %87, %94 : vector<4x16xf32>
      %96 = math.log %93 : vector<4x16xf32>
      %97 = arith.addf %95, %96 : vector<4x16xf32>
      %98 = vector.broadcast %90 : vector<4x1xf32> to vector<4x16xf32>
      %99 = arith.subf %97, %98 : vector<4x16xf32>
      %100 = arith.addf %84, %90 : vector<4x1xf32>
      %101 = arith.addi %3, %c3_i32 : i32
      %102 = vector.broadcast %101 : i32 to vector<4x1xi32>
      %103 = arith.cmpi slt, %102, %12 : vector<4x1xi32>
      %104 = vector.shape_cast %103 : vector<4x1xi1> to vector<4x1xi1>
      %105 = vector.broadcast %104 : vector<4x1xi1> to vector<4x16xi1>
      %106 = arith.select %105, %99, %83 : vector<4x16xi1>, vector<4x16xf32>
      %107 = arith.select %103, %100, %84 : vector<4x1xi1>, vector<4x1xf32>
      %c4_i32 = arith.constant 4 : i32
      %c0_34 = arith.constant 0 : index
      %108 = arith.index_cast %c4_i32 : i32 to index
      %c0_35 = arith.constant 0 : index
      %109 = vector.load %arg3[%c0_34, %108, %c0_35] : memref<4x8x16xf32, #tpu.memory_space<vmem>>, vector<4x1x16xf32>
      %110 = vector.shape_cast %109 : vector<4x1x16xf32> to vector<4x16xf32>
      %111 = math.exp %106 : vector<4x16xf32>
      %cst_36 = arith.constant dense<0xFF800000> : vector<4xf32>
      %112 = vector.multi_reduction <maximumf>, %106, %cst_36 [1] : vector<4x16xf32> to vector<4xf32>
      %113 = vector.shape_cast %112 : vector<4xf32> to vector<4x1xf32>
      %cst_37 = arith.constant dense<0.000000e+00> : vector<4x16xf32>
      %114 = tpu.matmul %111, %13, %cst_37 {dimension_numbers = #tpu.dot_dimension_numbers<[1], [0], [0], [1], [0, 0, 1, 1], [], []>} : vector<4x16xf32>, vector<16x16xf32>, vector<4x16xf32> -> vector<4x16xf32>
      %cst_38 = arith.constant 1.000000e-35 : f32
      %115 = vector.broadcast %cst_38 : f32 to vector<4x16xf32>
      %116 = arith.maximumf %114, %115 : vector<4x16xf32>
      %117 = vector.broadcast %11 : vector<1x16xf32> to vector<4x16xf32>
      %118 = arith.addf %110, %117 : vector<4x16xf32>
      %119 = math.log %116 : vector<4x16xf32>
      %120 = arith.addf %118, %119 : vector<4x16xf32>
      %121 = vector.broadcast %113 : vector<4x1xf32> to vector<4x16xf32>
      %122 = arith.subf %120, %121 : vector<4x16xf32>
      %123 = arith.addf %107, %113 : vector<4x1xf32>
      %124 = arith.addi %3, %c4_i32 : i32
      %125 = vector.broadcast %124 : i32 to vector<4x1xi32>
      %126 = arith.cmpi slt, %125, %12 : vector<4x1xi32>
      %127 = vector.shape_cast %126 : vector<4x1xi1> to vector<4x1xi1>
      %128 = vector.broadcast %127 : vector<4x1xi1> to vector<4x16xi1>
      %129 = arith.select %128, %122, %106 : vector<4x16xi1>, vector<4x16xf32>
      %130 = arith.select %126, %123, %107 : vector<4x1xi1>, vector<4x1xf32>
      %c5_i32 = arith.constant 5 : i32
      %c0_39 = arith.constant 0 : index
      %131 = arith.index_cast %c5_i32 : i32 to index
      %c0_40 = arith.constant 0 : index
      %132 = vector.load %arg3[%c0_39, %131, %c0_40] : memref<4x8x16xf32, #tpu.memory_space<vmem>>, vector<4x1x16xf32>
      %133 = vector.shape_cast %132 : vector<4x1x16xf32> to vector<4x16xf32>
      %134 = math.exp %129 : vector<4x16xf32>
      %cst_41 = arith.constant dense<0xFF800000> : vector<4xf32>
      %135 = vector.multi_reduction <maximumf>, %129, %cst_41 [1] : vector<4x16xf32> to vector<4xf32>
      %136 = vector.shape_cast %135 : vector<4xf32> to vector<4x1xf32>
      %cst_42 = arith.constant dense<0.000000e+00> : vector<4x16xf32>
      %137 = tpu.matmul %134, %13, %cst_42 {dimension_numbers = #tpu.dot_dimension_numbers<[1], [0], [0], [1], [0, 0, 1, 1], [], []>} : vector<4x16xf32>, vector<16x16xf32>, vector<4x16xf32> -> vector<4x16xf32>
      %cst_43 = arith.constant 1.000000e-35 : f32
      %138 = vector.broadcast %cst_43 : f32 to vector<4x16xf32>
      %139 = arith.maximumf %137, %138 : vector<4x16xf32>
      %140 = vector.broadcast %11 : vector<1x16xf32> to vector<4x16xf32>
      %141 = arith.addf %133, %140 : vector<4x16xf32>
      %142 = math.log %139 : vector<4x16xf32>
      %143 = arith.addf %141, %142 : vector<4x16xf32>
      %144 = vector.broadcast %136 : vector<4x1xf32> to vector<4x16xf32>
      %145 = arith.subf %143, %144 : vector<4x16xf32>
      %146 = arith.addf %130, %136 : vector<4x1xf32>
      %147 = arith.addi %3, %c5_i32 : i32
      %148 = vector.broadcast %147 : i32 to vector<4x1xi32>
      %149 = arith.cmpi slt, %148, %12 : vector<4x1xi32>
      %150 = vector.shape_cast %149 : vector<4x1xi1> to vector<4x1xi1>
      %151 = vector.broadcast %150 : vector<4x1xi1> to vector<4x16xi1>
      %152 = arith.select %151, %145, %129 : vector<4x16xi1>, vector<4x16xf32>
      %153 = arith.select %149, %146, %130 : vector<4x1xi1>, vector<4x1xf32>
      %c6_i32 = arith.constant 6 : i32
      %c0_44 = arith.constant 0 : index
      %154 = arith.index_cast %c6_i32 : i32 to index
      %c0_45 = arith.constant 0 : index
      %155 = vector.load %arg3[%c0_44, %154, %c0_45] : memref<4x8x16xf32, #tpu.memory_space<vmem>>, vector<4x1x16xf32>
      %156 = vector.shape_cast %155 : vector<4x1x16xf32> to vector<4x16xf32>
      %157 = math.exp %152 : vector<4x16xf32>
      %cst_46 = arith.constant dense<0xFF800000> : vector<4xf32>
      %158 = vector.multi_reduction <maximumf>, %152, %cst_46 [1] : vector<4x16xf32> to vector<4xf32>
      %159 = vector.shape_cast %158 : vector<4xf32> to vector<4x1xf32>
      %cst_47 = arith.constant dense<0.000000e+00> : vector<4x16xf32>
      %160 = tpu.matmul %157, %13, %cst_47 {dimension_numbers = #tpu.dot_dimension_numbers<[1], [0], [0], [1], [0, 0, 1, 1], [], []>} : vector<4x16xf32>, vector<16x16xf32>, vector<4x16xf32> -> vector<4x16xf32>
      %cst_48 = arith.constant 1.000000e-35 : f32
      %161 = vector.broadcast %cst_48 : f32 to vector<4x16xf32>
      %162 = arith.maximumf %160, %161 : vector<4x16xf32>
      %163 = vector.broadcast %11 : vector<1x16xf32> to vector<4x16xf32>
      %164 = arith.addf %156, %163 : vector<4x16xf32>
      %165 = math.log %162 : vector<4x16xf32>
      %166 = arith.addf %164, %165 : vector<4x16xf32>
      %167 = vector.broadcast %159 : vector<4x1xf32> to vector<4x16xf32>
      %168 = arith.subf %166, %167 : vector<4x16xf32>
      %169 = arith.addf %153, %159 : vector<4x1xf32>
      %170 = arith.addi %3, %c6_i32 : i32
      %171 = vector.broadcast %170 : i32 to vector<4x1xi32>
      %172 = arith.cmpi slt, %171, %12 : vector<4x1xi32>
      %173 = vector.shape_cast %172 : vector<4x1xi1> to vector<4x1xi1>
      %174 = vector.broadcast %173 : vector<4x1xi1> to vector<4x16xi1>
      %175 = arith.select %174, %168, %152 : vector<4x16xi1>, vector<4x16xf32>
      %176 = arith.select %172, %169, %153 : vector<4x1xi1>, vector<4x1xf32>
      %c7_i32 = arith.constant 7 : i32
      %c0_49 = arith.constant 0 : index
      %177 = arith.index_cast %c7_i32 : i32 to index
      %c0_50 = arith.constant 0 : index
      %178 = vector.load %arg3[%c0_49, %177, %c0_50] : memref<4x8x16xf32, #tpu.memory_space<vmem>>, vector<4x1x16xf32>
      %179 = vector.shape_cast %178 : vector<4x1x16xf32> to vector<4x16xf32>
      %180 = math.exp %175 : vector<4x16xf32>
      %cst_51 = arith.constant dense<0xFF800000> : vector<4xf32>
      %181 = vector.multi_reduction <maximumf>, %175, %cst_51 [1] : vector<4x16xf32> to vector<4xf32>
      %182 = vector.shape_cast %181 : vector<4xf32> to vector<4x1xf32>
      %cst_52 = arith.constant dense<0.000000e+00> : vector<4x16xf32>
      %183 = tpu.matmul %180, %13, %cst_52 {dimension_numbers = #tpu.dot_dimension_numbers<[1], [0], [0], [1], [0, 0, 1, 1], [], []>} : vector<4x16xf32>, vector<16x16xf32>, vector<4x16xf32> -> vector<4x16xf32>
      %cst_53 = arith.constant 1.000000e-35 : f32
      %184 = vector.broadcast %cst_53 : f32 to vector<4x16xf32>
      %185 = arith.maximumf %183, %184 : vector<4x16xf32>
      %186 = vector.broadcast %11 : vector<1x16xf32> to vector<4x16xf32>
      %187 = arith.addf %179, %186 : vector<4x16xf32>
      %188 = math.log %185 : vector<4x16xf32>
      %189 = arith.addf %187, %188 : vector<4x16xf32>
      %190 = vector.broadcast %182 : vector<4x1xf32> to vector<4x16xf32>
      %191 = arith.subf %189, %190 : vector<4x16xf32>
      %192 = arith.addf %176, %182 : vector<4x1xf32>
      %193 = arith.addi %3, %c7_i32 : i32
      %194 = vector.broadcast %193 : i32 to vector<4x1xi32>
      %195 = arith.cmpi slt, %194, %12 : vector<4x1xi32>
      %196 = vector.shape_cast %195 : vector<4x1xi1> to vector<4x1xi1>
      %197 = vector.broadcast %196 : vector<4x1xi1> to vector<4x16xi1>
      %198 = arith.select %197, %191, %175 : vector<4x16xi1>, vector<4x16xf32>
      %199 = arith.select %195, %192, %176 : vector<4x1xi1>, vector<4x1xf32>
      %c8_i32_54 = arith.constant 8 : i32
      %c0_55 = arith.constant 0 : index
      %c0_56 = arith.constant 0 : index
      %200 = vector.load %arg9[%c0_55, %c0_56] : memref<4x16xf32, #tpu.memory_space<vmem>>, vector<4x16xf32>
      tpu.vector_store %arg9[%c0_55, %c0_56], %198 {strides = array<i32>} : memref<4x16xf32, #tpu.memory_space<vmem>>, vector<4x16xf32>,
      %c0_57 = arith.constant 0 : index
      %c0_58 = arith.constant 0 : index
      %201 = vector.load %arg10[%c0_57, %c0_58] : memref<4x1xf32, #tpu.memory_space<vmem>>, vector<4x1xf32>
      tpu.vector_store %arg10[%c0_57, %c0_58], %199 {strides = array<i32>} : memref<4x1xf32, #tpu.memory_space<vmem>>, vector<4x1xf32>,
    } else {
    }
    %c0_i32_2 = arith.constant 0 : i32
    %8 = arith.cmpi eq, %arg1, %c0_i32_2 : i32
    %9 = arith.extui %8 : i1 to i32
    %c0_i32_3 = arith.constant 0 : i32
    %10 = arith.cmpi ne, %9, %c0_i32_3 : i32
    scf.if %10 {
      %c0_4 = arith.constant 0 : index
      %c0_5 = arith.constant 0 : index
      %11 = vector.load %arg9[%c0_4, %c0_5] : memref<4x16xf32, #tpu.memory_space<vmem>>, vector<4x16xf32>
      %c0_6 = arith.constant 0 : index
      %c0_7 = arith.constant 0 : index
      %12 = vector.load %arg7[%c0_6, %c0_7] : memref<1x16xf32, #tpu.memory_space<vmem>>, vector<1x16xf32>
      %13 = vector.broadcast %12 : vector<1x16xf32> to vector<4x16xf32>
      %14 = arith.addf %11, %13 : vector<4x16xf32>
      %cst = arith.constant dense<0xFF800000> : vector<4xf32>
      %15 = vector.multi_reduction <maximumf>, %14, %cst [1] : vector<4x16xf32> to vector<4xf32>
      %16 = vector.shape_cast %15 : vector<4xf32> to vector<4x1xf32>
      %c0_8 = arith.constant 0 : index
      %c0_9 = arith.constant 0 : index
      %17 = vector.load %arg10[%c0_8, %c0_9] : memref<4x1xf32, #tpu.memory_space<vmem>>, vector<4x1xf32>
      %18 = arith.addf %17, %16 : vector<4x1xf32>
      %19 = vector.broadcast %16 : vector<4x1xf32> to vector<4x16xf32>
      %20 = arith.subf %14, %19 : vector<4x16xf32>
      %21 = math.exp %20 : vector<4x16xf32>
      %cst_10 = arith.constant dense<0.000000e+00> : vector<4xf32>
      %22 = vector.multi_reduction <add>, %21, %cst_10 [1] : vector<4x16xf32> to vector<4xf32>
      %23 = vector.shape_cast %22 : vector<4xf32> to vector<4x1xf32>
      %24 = math.log %23 : vector<4x1xf32>
      %25 = arith.addf %18, %24 : vector<4x1xf32>
      %c0_11 = arith.constant 0 : index
      %c0_12 = arith.constant 0 : index
      %26 = vector.load %arg8[%c0_11, %c0_12] : memref<4x1xf32, #tpu.memory_space<vmem>>, vector<4x1xf32>
      tpu.vector_store %arg8[%c0_11, %c0_12], %25 {strides = array<i32>} : memref<4x1xf32, #tpu.memory_space<vmem>>, vector<4x1xf32>,
    } else {
    }
    return
  }
  func.func @transform_0(%arg0: i32, %arg1: i32, %arg2: memref<1xi32, #tpu.memory_space<smem>>) -> (i32, i32, i32) {
    %c0_i32 = arith.constant 0 : i32
    %c0_i32_0 = arith.constant 0 : i32
    return %arg0, %arg1, %c0_i32 : i32, i32, i32
  }
  func.func @transform_1(%arg0: i32, %arg1: i32, %arg2: memref<1xi32, #tpu.memory_space<smem>>) -> (i32, i32) {
    %c0_i32 = arith.constant 0 : i32
    %c0_i32_0 = arith.constant 0 : i32
    return %arg0, %c0_i32 : i32, i32
  }
  func.func @transform_2(%arg0: i32, %arg1: i32, %arg2: memref<1xi32, #tpu.memory_space<smem>>) -> (i32, i32) {
    %c0_i32 = arith.constant 0 : i32
    %c0_i32_0 = arith.constant 0 : i32
    %c0_i32_1 = arith.constant 0 : i32
    return %c0_i32, %c0_i32_0 : i32, i32
  }
  func.func @transform_3(%arg0: i32, %arg1: i32, %arg2: memref<1xi32, #tpu.memory_space<smem>>) -> (i32, i32) {
    %c0_i32 = arith.constant 0 : i32
    %c0_i32_0 = arith.constant 0 : i32
    %c0_i32_1 = arith.constant 0 : i32
    return %c0_i32, %c0_i32_0 : i32, i32
  }
  func.func @transform_4(%arg0: i32, %arg1: i32, %arg2: memref<1xi32, #tpu.memory_space<smem>>) -> (i32, i32) {
    %c0_i32 = arith.constant 0 : i32
    %c0_i32_0 = arith.constant 0 : i32
    %c0_i32_1 = arith.constant 0 : i32
    return %c0_i32, %c0_i32_0 : i32, i32
  }
  func.func @transform_5(%arg0: i32, %arg1: i32, %arg2: memref<1xi32, #tpu.memory_space<smem>>) -> (i32, i32) {
    %c0_i32 = arith.constant 0 : i32
    %c0_i32_0 = arith.constant 0 : i32
    return %arg0, %c0_i32 : i32, i32
  }
}

</mosaic_0001>

<bundles_post_ra>
// kernel: tpu_custom_call.1
= control target key start
LH: loop header
LB: loop body
LE: loop exit
PB: predicated region body
PF: predicated region fallthrough
CT: control target
= control target key end

     0   :  { %12 = vsyncpa [#allocation7], 0  ;;  %s1112_s0 = inlined_call_operand.<no memory space> [shape: s32[1], index: 0, kind: input, shape index: {}]   ;;  %s1113_s1 = inlined_call_operand.hbm [shape: f32[4,8,16], index: 1, kind: input, shape index: {}]   ;;  %s1114_s2 = inlined_call_operand.vmem [shape: s32[4,1], index: 2, kind: input, shape index: {}]   ;;  %s1115_s3 = inlined_call_operand.hbm [shape: f32[16,16], index: 3, kind: input, shape index: {}]   ;;  %s1116_s4 = inlined_call_operand.vmem [shape: f32[1,16], index: 4, kind: input, shape index: {}]   ;;  %s1117_s5 = inlined_call_operand.vmem [shape: f32[1,16], index: 5, kind: input, shape index: {}]   ;;  %s1118_s6 = inlined_call_operand.vmem [shape: f32[4,1], index: 6, kind: output, shape index: {}]  }
   0x1   :  { %s18_s23 = sshll.u32 %s1113_s1, 4  ;;  %s19_s23 = int_to_ptr.hbm [resolvable:$true] %s18_s23 }
   0x2   :  { %13 = vsyncpa [#allocation9], 0  ;;  %s918_s24 = smov [#allocation6]   ;;  %s33_s28 = sshll.u32 %s1115_s3, 4  ;;  %s34_s28 = int_to_ptr.hbm [resolvable:$true] %s33_s28 }
   0x3   :  { %s20_s25 = sshll.u32 %s918_s24, 4  ;;  %s919_s29 = smov 128   ;;  %s21_s25 = int_to_ptr.vmem [resolvable:$true] %s20_s25 }
   0x4   :  { %s920_s30 = smov 8   ;;  %s921_s7 = smov [#allocation8]  }
   0x5   :  { %26 = dma.hbm_to_vmem [thread:$0]  %s19_s23, 512, %s21_s25, [#allocation7], %s919_s29, %s919_s29, %s920_s30  }
   0x6   :  { %s35_s8 = sshll.u32 %s921_s7, 4  ;;  %s36_s8 = int_to_ptr.vmem [resolvable:$true] %s35_s8 }
   0x7   :  { %41 = dma.hbm_to_vmem [thread:$0]  %s34_s28, 256, %s36_s8, [#allocation9], %s919_s29, %s919_s29, %s920_s30  }
   0x8   :  { %914 = dma.done.wait [#allocation7], 512  }
   0x9   :  { %915 = vsyncadd [#allocation7], 4294966784 }
   0xa   :  { %916 = dma.done.wait [#allocation9], 256  }
   0xb   :  { %917 = vsyncadd [#allocation9], 4294967040  ;;  %v58_v0 = vlaneseq  ;;  %vm64_vm0 = vcmask 3072   ;;  %v922_v2 = vmov 0.0   ;;  %vm62_vm1 = vcmask 125952   ;;  %p801_p0 = scmp.le.s32.totalorder %s1112_s0, 0 }
   0xc   :  { %65 = vst.msk [vmem:[#allocation3] sm:$0xf] %vm64_vm0, %v922_v2  ;;  %v923_v3 = vmov -10000.0  }
   0xd   :  { %v59_v1 = vand.u32 127, %v58_v0  ;;  %71 = sbr.rel (%p801_p0) target bundleno = 1314 (0x522), region = 37 }
   0xf   :  { %vm60_vm2 = vcmp.eq.s32.totalorder %v59_v1, 1 }
  0x10   :  { %v61_v4 = vsel %vm60_vm2, 0.0, %v923_v3 }
  0x11   :  { %63 = vst.msk [vmem:[#allocation2] sm:$0xf] %vm62_vm1, %v61_v4 }
  0x12   :  { %v75_v5 = vld [vmem:[#allocation8 + $0x8] sm:$0xff]  ;;  %v74_v6 = vld [vmem:[#allocation8] sm:$0xff]  ;;  %v924_v10 = vmov 0   ;;  %vm88_vm3 = vcmask 130048   ;;  %v983_v12 = vld [vmem:[%s1114_s2] sm:$0xf] }
  0x13   :  { %106 = vmatpush.msra.mxu0 %v75_v5  ;;  %825 = vset.pattern.permute.xlu0 %v924_v10  ;;  %vm803_vm4 = vcmp.gt.s32.totalorder %v983_v12, 0  ;;  %vm811_vm5 = vcmp.gt.s32.totalorder %v983_v12, 4  ;;  %v996_v17 = vld [vmem:[%s1116_s4] ss:$0 sm:$0xff]  ;;  %v78_v18 = vld [vmem:[#allocation6] sm:$0x1] }
  0x14   :  { %196 = vmatpush.msra.mxu1 %v75_v5  ;;  %826 = vset.pattern.permute.xlu1 %v924_v10  ;;  %v149_v13 = vsel %vm803_vm4, 1, %v924_v10  ;;  %v492_v14 = vsel %vm811_vm5, 1, %v924_v10  ;;  %v79_v19 = vld [vmem:[#allocation6 + $0x8] sm:$0x1]  ;;  %v80_v20 = vld [vmem:[#allocation6 + $0x10] sm:$0x1]  ;;  %v116_v23 = vadd.f32 %v996_v17, %v78_v18 }
  0x15   :  { %107 = vmatpush.msra.mxu0 %v74_v6  ;;  %281 = vmatpush.msra.mxu2 %v75_v5  ;;  %v81_v21 = vld [vmem:[#allocation6 + $0x18] sm:$0x1]  ;;  %v117_v26 = vadd.f32 %v996_v17, %v79_v19  ;;  %v118_v27 = vadd.f32 %v996_v17, %v80_v20  ;;  %vm159_vm6 = vcmask 1041409   ;;  %vm162_vm7 = vcmask 1042434   ;;  %v77_v56 = vld [vmem:[#allocation3] sm:$0xf] }
  0x16   :  { %197 = vmatpush.msra.mxu1 %v74_v6  ;;  %827 = vset.pattern.permute.xlu2 %v924_v10  ;;  %v119_v28 = vadd.f32 %v996_v17, %v81_v21  ;;  %vm165_vm8 = vcmask 1043459   ;;  %vm805_vm10 = vcmp.gt.s32.totalorder %v983_v12, 1  ;;  %vm809_vm11 = vcmp.gt.s32.totalorder %v983_v12, 3  ;;  %v170_v0 = vld [vmem:[#allocation6 + $0x1] sm:$0x1] }
  0x17   :  { %366 = vmatpush.msra.mxu3 %v75_v5  ;;  %282 = vmatpush.msra.mxu2 %v74_v6  ;;  %v237_v54 = vsel %vm805_vm10, 1, %v924_v10  ;;  %v407_v55 = vsel %vm809_vm11, 1, %v924_v10  ;;  %v171_v1 = vld [vmem:[#allocation6 + $0x9] sm:$0x1]  ;;  %v172_v2 = vld [vmem:[#allocation6 + $0x11] sm:$0x1] }
  0x18   :  { %v971_v7 = vld [vmem:[#allocation2] sm:$0xf]  ;;  %451 = vmatpush.msrb.mxu0 %v75_v5  ;;  %536 = vmatpush.msrb.mxu1 %v75_v5  ;;  %vm807_vm13 = vcmp.gt.s32.totalorder %v983_v12, 2  ;;  %vm813_vm15 = vcmp.gt.s32.totalorder %v983_v12, 5 }
  0x19   :  { %v82_v8 = vmul.f32 1.442695, %v971_v7  ;;  %v85_v9 = vsel %vm62_vm1, %v971_v7, -inf  ;;  %367 = vmatpush.msra.mxu3 %v74_v6  ;;  %621 = vmatpush.msrb.mxu2 %v75_v5  ;;  %v173_v3 = vld [vmem:[#allocation6 + $0x19] sm:$0x1] }
  0x1a   :  { %86 = vmax.xlane.f32.xlu0 %v85_v9  ;;  %452 = vmatpush.msrb.mxu0 %v74_v6  ;;  %v206_v9 = vadd.f32 %v996_v17, %v173_v3 }
  0x1b   :  { %829 = vpow2.f32 %v82_v8  ;;  %537 = vmatpush.msrb.mxu1 %v74_v6  ;;  %706 = vmatpush.msrb.mxu3 %v75_v5  ;;  %v203_v5 = vadd.f32 %v996_v17, %v170_v0 }
  0x1c   :  { %622 = vmatpush.msrb.mxu2 %v74_v6 }
  0x1d   :  { %707 = vmatpush.msrb.mxu3 %v74_v6  ;;  %v204_v6 = vadd.f32 %v996_v17, %v171_v1 }
  0x21   :  { %v830_v11 = vpop.eup %829 }
  0x22   :  { %802 = vmatmul.msk.f32.vlgmr.msra.gmra.mxu0 %vm88_vm3, %v830_v11 }
  0x2e   :  { %151 = vperm.xlu0 %825, %v149_v13  }
  0x36   :  { %494 = vperm.xlu0 %825, %v492_v14  }
  0x8d   :  { %v87_v25 = vpop.xlane.xlu0 %86 }
  0x8e   :  { %v135_v32 = vrot.slane %v87_v25, 1  ;;  %v136_v33 = vrot.slane %v87_v25, 2  ;;  %v137_v34 = vrot.slane %v87_v25, 3  ;;  %v146_v57 = vadd.f32 %v87_v25, %v77_v56 }
  0x90   :  { %v169_v58 = vsel %vm803_vm4, %v146_v57, %v77_v56 }
  0x9f   :  { %v109_v15 = vpop.f32.mrf.mxu0 }
  0xa0   :  { %v112_v16 = vmax.f32 %v109_v15, 1e-35  ;;  %v152_v45 = vpop.permute.xlu0 %151 }
  0xa1   :  { %vm153_vm9 = vcmp.eq.s32.totalorder %v152_v45, 1  ;;  %v256_v45 = vld [vmem:[#allocation6 + $0xa] sm:$0x1] }
  0xa2   :  { %831 = vlog2.f32 %v112_v16 }
  0xa8   :  { %v832_v22 = vpop.eup %831 }
  0xa9   :  { %v121_v24 = vmul.f32 0.6931472, %v832_v22 }
  0xab   :  { %v123_v29 = vrot.slane %v121_v24, 1  ;;  %v124_v30 = vrot.slane %v121_v24, 2  ;;  %v125_v31 = vrot.slane %v121_v24, 3  ;;  %v130_v35 = vadd.f32 %v121_v24, %v116_v23 }
  0xad   :  { %v131_v36 = vadd.f32 %v123_v29, %v117_v26  ;;  %v132_v37 = vadd.f32 %v124_v30, %v118_v27  ;;  %v133_v38 = vadd.f32 %v125_v31, %v119_v28  ;;  %v142_v42 = vsub.f32 %v130_v35, %v87_v25 }
  0xaf   :  { %v143_v39 = vsub.f32 %v131_v36, %v135_v32  ;;  %v144_v40 = vsub.f32 %v132_v37, %v136_v33  ;;  %v145_v41 = vsub.f32 %v133_v38, %v137_v34  ;;  %v322_v38 = vsel %vm807_vm13, 1, %v924_v10 }
  0xb1   :  { %v158_v43 = vrot.slane %v143_v39, 7  ;;  %v161_v44 = vrot.slane %v144_v40, 6  ;;  %v164_v47 = vrot.slane %v145_v41, 5 }
  0xb3   :  { %v160_v46 = vsel %vm159_vm6, %v158_v43, %v142_v42 }
  0xb4   :  { %v163_v48 = vsel %vm162_vm7, %v161_v44, %v160_v46  ;;  %v255_v44 = vld [vmem:[#allocation6 + $0x2] sm:$0x1]  ;;  %v257_v46 = vld [vmem:[#allocation6 + $0x12] sm:$0x1] }
  0xb5   :  { %v166_v49 = vsel %vm165_vm8, %v164_v47, %v163_v48  ;;  %v258_v47 = vld [vmem:[#allocation6 + $0x1a] sm:$0x1] }
  0xb6   :  { %v168_v50 = vsel %vm153_vm9, %v166_v49, %v971_v7  ;;  %v205_v7 = vadd.f32 %v996_v17, %v172_v2  ;;  %v288_v49 = vadd.f32 %v996_v17, %v255_v44  ;;  %vm817_vm9 = vcmp.gt.s32.totalorder %v983_v12, 7 }
  0xb7   :  { %v176_v51 = vsel %vm62_vm1, %v168_v50, -inf  ;;  %v174_v52 = vmul.f32 1.442695, %v168_v50 }
  0xb8   :  { %177 = vmax.xlane.f32.xlu1 %v176_v51  ;;  %v290_v51 = vadd.f32 %v996_v17, %v257_v46 }
  0xb9   :  { %833 = vpow2.f32 %v174_v52 }
  0xbf   :  { %v834_v53 = vpop.eup %833 }
  0xc0   :  { %804 = vmatmul.msk.f32.vlgmr.msra.gmra.mxu1 %vm88_vm3, %v834_v53  ;;  %v291_v53 = vadd.f32 %v996_v17, %v258_v47 }
  0xd1   :  { %239 = vperm.xlu1 %826, %v237_v54  }
  0xd9   :  { %409 = vperm.xlu1 %826, %v407_v55  }
 0x12b   :  { %v178_v59 = vpop.xlane.xlu1 %177 }
 0x12c   :  { %v233_v60 = vadd.f32 %v178_v59, %v169_v58  ;;  %v222_v15 = vrot.slane %v178_v59, 1  ;;  %v223_v16 = vrot.slane %v178_v59, 2  ;;  %v224_v18 = vrot.slane %v178_v59, 3 }
 0x12e   :  { %v254_v61 = vsel %vm805_vm10, %v233_v60, %v169_v58  ;;  %vm815_vm10 = vcmp.gt.s32.totalorder %v983_v12, 6 }
 0x13d   :  { %v199_v62 = vpop.f32.mrf.mxu1 }
 0x13e   :  { %v202_v63 = vmax.f32 %v199_v62, 1e-35 }
 0x140   :  { %835 = vlog2.f32 %v202_v63 }
 0x143   :  { %v240_v29 = vpop.permute.xlu1 %239 }
 0x144   :  { %vm241_vm12 = vcmp.eq.s32.totalorder %v240_v29, 1 }
 0x146   :  { %v836_v4 = vpop.eup %835 }
 0x147   :  { %v208_v8 = vmul.f32 0.6931472, %v836_v4 }
 0x149   :  { %v210_v11 = vrot.slane %v208_v8, 1  ;;  %v211_v13 = vrot.slane %v208_v8, 2  ;;  %v212_v14 = vrot.slane %v208_v8, 3  ;;  %v217_v19 = vadd.f32 %v208_v8, %v203_v5 }
 0x14b   :  { %v218_v20 = vadd.f32 %v210_v11, %v204_v6  ;;  %v219_v21 = vadd.f32 %v211_v13, %v205_v7  ;;  %v220_v22 = vadd.f32 %v212_v14, %v206_v9  ;;  %v229_v26 = vsub.f32 %v217_v19, %v178_v59 }
 0x14d   :  { %v230_v23 = vsub.f32 %v218_v20, %v222_v15  ;;  %v231_v24 = vsub.f32 %v219_v21, %v223_v16  ;;  %v232_v25 = vsub.f32 %v220_v22, %v224_v18  ;;  %v577_v18 = vsel %vm813_vm15, 1, %v924_v10 }
 0x14f   :  { %v246_v27 = vrot.slane %v230_v23, 7  ;;  %v248_v28 = vrot.slane %v231_v24, 6  ;;  %v250_v31 = vrot.slane %v232_v25, 5  ;;  %v340_v24 = vld [vmem:[#allocation6 + $0x3] sm:$0x1] }
 0x150   :  { %v341_v25 = vld [vmem:[#allocation6 + $0xb] sm:$0x1]  ;;  %v373_v29 = vadd.f32 %v996_v17, %v340_v24 }
 0x151   :  { %v247_v30 = vsel %vm159_vm6, %v246_v27, %v229_v26  ;;  %v342_v26 = vld [vmem:[#allocation6 + $0x13] sm:$0x1]  ;;  %v343_v27 = vld [vmem:[#allocation6 + $0x1b] sm:$0x1] }
 0x152   :  { %v249_v32 = vsel %vm162_vm7, %v248_v28, %v247_v30  ;;  %v374_v30 = vadd.f32 %v996_v17, %v341_v25 }
 0x153   :  { %v251_v33 = vsel %vm165_vm8, %v250_v31, %v249_v32  ;;  %v375_v31 = vadd.f32 %v996_v17, %v342_v26 }
 0x154   :  { %v253_v34 = vsel %vm241_vm12, %v251_v33, %v168_v50  ;;  %v289_v50 = vadd.f32 %v996_v17, %v256_v45  ;;  %v376_v33 = vadd.f32 %v996_v17, %v343_v27 }
 0x155   :  { %v261_v35 = vsel %vm62_vm1, %v253_v34, -inf  ;;  %v259_v36 = vmul.f32 1.442695, %v253_v34 }
 0x156   :  { %262 = vmax.xlane.f32.xlu2 %v261_v35 }
 0x157   :  { %837 = vpow2.f32 %v259_v36 }
 0x15d   :  { %v838_v37 = vpop.eup %837 }
 0x15e   :  { %806 = vmatmul.msk.f32.vlgmr.msra.gmra.mxu2 %vm88_vm3, %v838_v37 }
 0x16e   :  { %324 = vperm.xlu2 %827, %v322_v38  }
 0x1c9   :  { %v263_v39 = vpop.xlane.xlu2 %262 }
 0x1ca   :  { %v318_v40 = vadd.f32 %v263_v39, %v254_v61  ;;  %v307_v57 = vrot.slane %v263_v39, 1  ;;  %v308_v58 = vrot.slane %v263_v39, 2  ;;  %v309_v59 = vrot.slane %v263_v39, 3 }
 0x1cc   :  { %v339_v41 = vsel %vm807_vm13, %v318_v40, %v254_v61 }
 0x1d1   :  { %v325_v3 = vpop.permute.xlu2 %324 }
 0x1d2   :  { %vm326_vm14 = vcmp.eq.s32.totalorder %v325_v3, 1 }
 0x1e1   :  { %v284_v42 = vpop.f32.mrf.mxu2 }
 0x1e2   :  { %v287_v43 = vmax.f32 %v284_v42, 1e-35 }
 0x1e4   :  { %839 = vlog2.f32 %v287_v43 }
 0x1ea   :  { %v840_v48 = vpop.eup %839 }
 0x1eb   :  { %v293_v52 = vmul.f32 0.6931472, %v840_v48 }
 0x1ed   :  { %v295_v54 = vrot.slane %v293_v52, 1  ;;  %v296_v55 = vrot.slane %v293_v52, 2  ;;  %v297_v56 = vrot.slane %v293_v52, 3  ;;  %v302_v60 = vadd.f32 %v293_v52, %v288_v49 }
 0x1ef   :  { %v303_v61 = vadd.f32 %v295_v54, %v289_v50  ;;  %v304_v62 = vadd.f32 %v296_v55, %v290_v51  ;;  %v305_v63 = vadd.f32 %v297_v56, %v291_v53  ;;  %v314_v4 = vsub.f32 %v302_v60, %v263_v39  ;;  %v410_v50 = vpop.permute.xlu1 %409 }
 0x1f0   :  { %vm411_vm2 = vcmp.eq.s32.totalorder %v410_v50, 1 }
 0x1f1   :  { %v315_v0 = vsub.f32 %v303_v61, %v307_v57  ;;  %v316_v1 = vsub.f32 %v304_v62, %v308_v58  ;;  %v317_v2 = vsub.f32 %v305_v63, %v309_v59  ;;  %v425_v61 = vld [vmem:[#allocation6 + $0x4] sm:$0x1]  ;;  %v426_v62 = vld [vmem:[#allocation6 + $0xc] sm:$0x1]  ;;  %v427_v63 = vld [vmem:[#allocation6 + $0x14] sm:$0x1] }
 0x1f3   :  { %v331_v5 = vrot.slane %v315_v0, 7  ;;  %v333_v6 = vrot.slane %v316_v1, 6  ;;  %v335_v8 = vrot.slane %v317_v2, 5  ;;  %v428_v0 = vld [vmem:[#allocation6 + $0x1c] sm:$0x1]  ;;  %v458_v2 = vadd.f32 %v996_v17, %v425_v61 }
 0x1f5   :  { %v332_v7 = vsel %vm159_vm6, %v331_v5, %v314_v4  ;;  %v459_v4 = vadd.f32 %v996_v17, %v426_v62  ;;  %v460_v5 = vadd.f32 %v996_v17, %v427_v63 }
 0x1f6   :  { %v334_v9 = vsel %vm162_vm7, %v333_v6, %v332_v7  ;;  %v461_v7 = vadd.f32 %v996_v17, %v428_v0 }
 0x1f7   :  { %v336_v11 = vsel %vm165_vm8, %v335_v8, %v334_v9 }
 0x1f8   :  { %v338_v13 = vsel %vm326_vm14, %v336_v11, %v253_v34 }
 0x1f9   :  { %v346_v14 = vsel %vm62_vm1, %v338_v13, -inf  ;;  %v344_v15 = vmul.f32 1.442695, %v338_v13 }
 0x1fa   :  { %347 = vmax.xlane.f32.xlu2 %v346_v14 }
 0x1fb   :  { %841 = vpow2.f32 %v344_v15 }
 0x201   :  { %v842_v16 = vpop.eup %841 }
 0x202   :  { %808 = vmatmul.msk.f32.vlgmr.msra.gmra.mxu3 %vm88_vm3, %v842_v16 }
 0x212   :  { %579 = vperm.xlu2 %827, %v577_v18  }
 0x26d   :  { %v348_v19 = vpop.xlane.xlu2 %347 }
 0x26e   :  { %v403_v20 = vadd.f32 %v348_v19, %v339_v41  ;;  %v392_v37 = vrot.slane %v348_v19, 1  ;;  %v393_v38 = vrot.slane %v348_v19, 2  ;;  %v394_v39 = vrot.slane %v348_v19, 3 }
 0x270   :  { %v1042_v21 = vsel %vm809_vm11, %v403_v20, %v339_v41 }
 0x285   :  { %v369_v22 = vpop.f32.mrf.mxu3 }
 0x286   :  { %v372_v23 = vmax.f32 %v369_v22, 1e-35 }
 0x288   :  { %843 = vlog2.f32 %v372_v23 }
 0x28e   :  { %v844_v28 = vpop.eup %843 }
 0x28f   :  { %v378_v32 = vmul.f32 0.6931472, %v844_v28  ;;  %v495_v28 = vpop.permute.xlu0 %494 }
 0x290   :  { %vm496_vm4 = vcmp.eq.s32.totalorder %v495_v28, 1  ;;  %v598_v28 = vld [vmem:[#allocation6 + $0x1e] sm:$0x1] }
 0x291   :  { %v380_v34 = vrot.slane %v378_v32, 1  ;;  %v381_v35 = vrot.slane %v378_v32, 2  ;;  %v382_v36 = vrot.slane %v378_v32, 3  ;;  %v387_v40 = vadd.f32 %v378_v32, %v373_v29 }
 0x293   :  { %v388_v41 = vadd.f32 %v380_v34, %v374_v30  ;;  %v389_v42 = vadd.f32 %v381_v35, %v375_v31  ;;  %v390_v43 = vadd.f32 %v382_v36, %v376_v33  ;;  %v399_v47 = vsub.f32 %v387_v40, %v348_v19 }
 0x295   :  { %v400_v44 = vsub.f32 %v388_v41, %v392_v37  ;;  %v401_v45 = vsub.f32 %v389_v42, %v393_v38  ;;  %v402_v46 = vsub.f32 %v390_v43, %v394_v39  ;;  %v747_v37 = vsel %vm817_vm9, 1, %v924_v10 }
 0x297   :  { %v416_v48 = vrot.slane %v400_v44, 7  ;;  %v418_v49 = vrot.slane %v401_v45, 6  ;;  %v420_v52 = vrot.slane %v402_v46, 5  ;;  %v510_v45 = vld [vmem:[#allocation6 + $0x5] sm:$0x1] }
 0x298   :  { %v511_v46 = vld [vmem:[#allocation6 + $0xd] sm:$0x1]  ;;  %v543_v50 = vadd.f32 %v996_v17, %v510_v45 }
 0x299   :  { %v417_v51 = vsel %vm159_vm6, %v416_v48, %v399_v47  ;;  %v512_v47 = vld [vmem:[#allocation6 + $0x15] sm:$0x1]  ;;  %v513_v48 = vld [vmem:[#allocation6 + $0x1d] sm:$0x1] }
 0x29a   :  { %v419_v53 = vsel %vm162_vm7, %v418_v49, %v417_v51  ;;  %v544_v51 = vadd.f32 %v996_v17, %v511_v46 }
 0x29b   :  { %v421_v54 = vsel %vm165_vm8, %v420_v52, %v419_v53  ;;  %v545_v52 = vadd.f32 %v996_v17, %v512_v47  ;;  %v546_v53 = vadd.f32 %v996_v17, %v513_v48 }
 0x29c   :  { %v423_v55 = vsel %vm411_vm2, %v421_v54, %v338_v13 }
 0x29d   :  { %v431_v56 = vsel %vm62_vm1, %v423_v55, -inf  ;;  %v429_v57 = vmul.f32 1.442695, %v423_v55 }
 0x29e   :  { %432 = vmax.xlane.f32.xlu1 %v431_v56 }
 0x29f   :  { %845 = vpow2.f32 %v429_v57 }
 0x2a5   :  { %v846_v58 = vpop.eup %845 }
 0x2a6   :  { %810 = vmatmul.msk.f32.vlgmr.msrb.gmra.mxu0 %vm88_vm3, %v846_v58 }
 0x311   :  { %v433_v3 = vpop.xlane.xlu1 %432 }
 0x312   :  { %v477_v13 = vrot.slane %v433_v3, 1  ;;  %v478_v14 = vrot.slane %v433_v3, 2  ;;  %v479_v15 = vrot.slane %v433_v3, 3  ;;  %v488_v38 = vadd.f32 %v433_v3, %v1042_v21 }
 0x314   :  { %v509_v39 = vsel %vm811_vm5, %v488_v38, %v1042_v21 }
 0x323   :  { %v454_v59 = vpop.f32.mrf.mxu0 }
 0x324   :  { %v457_v60 = vmax.f32 %v454_v59, 1e-35 }
 0x326   :  { %847 = vlog2.f32 %v457_v60 }
 0x32c   :  { %v848_v1 = vpop.eup %847 }
 0x32d   :  { %v463_v6 = vmul.f32 0.6931472, %v848_v1 }
 0x32f   :  { %v465_v8 = vrot.slane %v463_v6, 1  ;;  %v466_v9 = vrot.slane %v463_v6, 2  ;;  %v467_v11 = vrot.slane %v463_v6, 3  ;;  %v472_v16 = vadd.f32 %v463_v6, %v458_v2  ;;  %v580_v6 = vpop.permute.xlu2 %579 }
 0x330   :  { %vm581_vm5 = vcmp.eq.s32.totalorder %v580_v6, 1 }
 0x331   :  { %v473_v18 = vadd.f32 %v465_v8, %v459_v4  ;;  %v474_v19 = vadd.f32 %v466_v9, %v460_v5  ;;  %v475_v20 = vadd.f32 %v467_v11, %v461_v7  ;;  %v484_v25 = vsub.f32 %v472_v16, %v433_v3 }
 0x333   :  { %v485_v22 = vsub.f32 %v473_v18, %v477_v13  ;;  %v486_v23 = vsub.f32 %v474_v19, %v478_v14  ;;  %v487_v24 = vsub.f32 %v475_v20, %v479_v15  ;;  %v662_v18 = vsel %vm815_vm10, 1, %v924_v10 }
 0x334   :  { %v631_v10 = vadd.f32 %v996_v17, %v598_v28 }
 0x335   :  { %v501_v26 = vrot.slane %v485_v22, 7  ;;  %v503_v27 = vrot.slane %v486_v23, 6  ;;  %v505_v30 = vrot.slane %v487_v24, 5 }
 0x337   :  { %v502_v29 = vsel %vm159_vm6, %v501_v26, %v484_v25  ;;  %v595_v25 = vld [vmem:[#allocation6 + $0x6] sm:$0x1]  ;;  %v596_v26 = vld [vmem:[#allocation6 + $0xe] sm:$0x1] }
 0x338   :  { %v504_v31 = vsel %vm162_vm7, %v503_v27, %v502_v29  ;;  %v597_v27 = vld [vmem:[#allocation6 + $0x16] sm:$0x1] }
 0x339   :  { %v506_v32 = vsel %vm165_vm8, %v505_v30, %v504_v31  ;;  %v628_v30 = vadd.f32 %v996_v17, %v595_v25  ;;  %v629_v31 = vadd.f32 %v996_v17, %v596_v26 }
 0x33a   :  { %v508_v33 = vsel %vm496_vm4, %v506_v32, %v423_v55  ;;  %v630_v32 = vadd.f32 %v996_v17, %v597_v27 }
 0x33b   :  { %v516_v34 = vsel %vm62_vm1, %v508_v33, -inf  ;;  %v514_v35 = vmul.f32 1.442695, %v508_v33 }
 0x33c   :  { %517 = vmax.xlane.f32.xlu0 %v516_v34 }
 0x33d   :  { %849 = vpow2.f32 %v514_v35 }
 0x343   :  { %v850_v36 = vpop.eup %849 }
 0x344   :  { %812 = vmatmul.msk.f32.vlgmr.msrb.gmra.mxu1 %vm88_vm3, %v850_v36 }
 0x350   :  { %749 = vperm.xlu0 %825, %v747_v37  }
 0x3af   :  { %v518_v40 = vpop.xlane.xlu0 %517 }
 0x3b0   :  { %v573_v41 = vadd.f32 %v518_v40, %v509_v39  ;;  %v562_v57 = vrot.slane %v518_v40, 1  ;;  %v563_v58 = vrot.slane %v518_v40, 2  ;;  %v564_v59 = vrot.slane %v518_v40, 3 }
 0x3b2   :  { %v594_v42 = vsel %vm813_vm15, %v573_v41, %v509_v39 }
 0x3c1   :  { %v539_v43 = vpop.f32.mrf.mxu1 }
 0x3c2   :  { %v542_v44 = vmax.f32 %v539_v43, 1e-35  ;;  %v750_v28 = vpop.permute.xlu0 %749 }
 0x3c4   :  { %851 = vlog2.f32 %v542_v44 }
 0x3ca   :  { %v852_v49 = vpop.eup %851 }
 0x3cb   :  { %v548_v21 = vmul.f32 0.6931472, %v852_v49 }
 0x3cd   :  { %v550_v54 = vrot.slane %v548_v21, 1  ;;  %v551_v55 = vrot.slane %v548_v21, 2  ;;  %v552_v56 = vrot.slane %v548_v21, 3  ;;  %v557_v60 = vadd.f32 %v548_v21, %v543_v50 }
 0x3cf   :  { %v558_v61 = vadd.f32 %v550_v54, %v544_v51  ;;  %v559_v62 = vadd.f32 %v551_v55, %v545_v52  ;;  %v560_v63 = vadd.f32 %v552_v56, %v546_v53  ;;  %v569_v3 = vsub.f32 %v557_v60, %v518_v40 }
 0x3d1   :  { %v570_v0 = vsub.f32 %v558_v61, %v562_v57  ;;  %v571_v1 = vsub.f32 %v559_v62, %v563_v58  ;;  %v572_v2 = vsub.f32 %v560_v63, %v564_v59  ;;  %v680_v63 = vld [vmem:[#allocation6 + $0x7] sm:$0x1] }
 0x3d3   :  { %v586_v4 = vrot.slane %v570_v0, 7  ;;  %v588_v5 = vrot.slane %v571_v1, 6  ;;  %v590_v8 = vrot.slane %v572_v2, 5  ;;  %v681_v0 = vld [vmem:[#allocation6 + $0xf] sm:$0x1] }
 0x3d4   :  { %v682_v1 = vld [vmem:[#allocation6 + $0x17] sm:$0x1]  ;;  %v683_v2 = vld [vmem:[#allocation6 + $0x1f] sm:$0x1] }
 0x3d5   :  { %v587_v7 = vsel %vm159_vm6, %v586_v4, %v569_v3  ;;  %v713_v4 = vadd.f32 %v996_v17, %v680_v63  ;;  %v715_v6 = vadd.f32 %v996_v17, %v682_v1 }
 0x3d6   :  { %v589_v9 = vsel %vm162_vm7, %v588_v5, %v587_v7  ;;  %v714_v5 = vadd.f32 %v996_v17, %v681_v0  ;;  %v716_v7 = vadd.f32 %v996_v17, %v683_v2 }
 0x3d7   :  { %v591_v11 = vsel %vm165_vm8, %v590_v8, %v589_v9 }
 0x3d8   :  { %v593_v13 = vsel %vm581_vm5, %v591_v11, %v508_v33 }
 0x3d9   :  { %v601_v14 = vsel %vm62_vm1, %v593_v13, -inf  ;;  %v599_v15 = vmul.f32 1.442695, %v593_v13 }
 0x3da   :  { %602 = vmax.xlane.f32.xlu1 %v601_v14 }
 0x3db   :  { %853 = vpow2.f32 %v599_v15 }
 0x3e1   :  { %v854_v16 = vpop.eup %853 }
 0x3e2   :  { %814 = vmatmul.msk.f32.vlgmr.msrb.gmra.mxu2 %vm88_vm3, %v854_v16 }
 0x3f3   :  { %664 = vperm.xlu1 %826, %v662_v18  }
 0x44d   :  { %v603_v19 = vpop.xlane.xlu1 %602 }
 0x44e   :  { %v658_v20 = vadd.f32 %v603_v19, %v594_v42  ;;  %v647_v37 = vrot.slane %v603_v19, 1  ;;  %v648_v38 = vrot.slane %v603_v19, 2  ;;  %v649_v39 = vrot.slane %v603_v19, 3 }
 0x450   :  { %v679_v22 = vsel %vm815_vm10, %v658_v20, %v594_v42 }
 0x465   :  { %v624_v23 = vpop.f32.mrf.mxu2  ;;  %v665_v50 = vpop.permute.xlu1 %664 }
 0x466   :  { %v627_v24 = vmax.f32 %v624_v23, 1e-35  ;;  %vm666_vm11 = vcmp.eq.s32.totalorder %v665_v50, 1 }
 0x468   :  { %855 = vlog2.f32 %v627_v24 }
 0x46e   :  { %v856_v29 = vpop.eup %855 }
 0x46f   :  { %v633_v33 = vmul.f32 0.6931472, %v856_v29 }
 0x471   :  { %v635_v34 = vrot.slane %v633_v33, 1  ;;  %v636_v35 = vrot.slane %v633_v33, 2  ;;  %v637_v36 = vrot.slane %v633_v33, 3  ;;  %v642_v40 = vadd.f32 %v633_v33, %v628_v30 }
 0x473   :  { %v643_v41 = vadd.f32 %v635_v34, %v629_v31  ;;  %v644_v42 = vadd.f32 %v636_v35, %v630_v32  ;;  %v645_v43 = vadd.f32 %v637_v36, %v631_v10  ;;  %v654_v47 = vsub.f32 %v642_v40, %v603_v19 }
 0x475   :  { %v655_v44 = vsub.f32 %v643_v41, %v647_v37  ;;  %v656_v45 = vsub.f32 %v644_v42, %v648_v38  ;;  %v657_v46 = vsub.f32 %v645_v43, %v649_v39 }
 0x477   :  { %v671_v48 = vrot.slane %v655_v44, 7  ;;  %v673_v49 = vrot.slane %v656_v45, 6  ;;  %v675_v52 = vrot.slane %v657_v46, 5 }
 0x479   :  { %v672_v51 = vsel %vm159_vm6, %v671_v48, %v654_v47 }
 0x47a   :  { %v674_v21 = vsel %vm162_vm7, %v673_v49, %v672_v51 }
 0x47b   :  { %v676_v53 = vsel %vm165_vm8, %v675_v52, %v674_v21 }
 0x47c   :  { %v678_v54 = vsel %vm666_vm11, %v676_v53, %v593_v13 }
 0x47d   :  { %v686_v55 = vsel %vm62_vm1, %v678_v54, -inf  ;;  %v684_v56 = vmul.f32 1.442695, %v678_v54 }
 0x47e   :  { %687 = vmax.xlane.f32.xlu2 %v686_v55 }
 0x47f   :  { %857 = vpow2.f32 %v684_v56 }
 0x485   :  { %v858_v57 = vpop.eup %857 }
 0x486   :  { %816 = vmatmul.msk.f32.vlgmr.msrb.gmra.mxu3 %vm88_vm3, %v858_v57  ;;  %vm751_vm3 = vcmp.eq.s32.totalorder %v750_v28, 1 }
 0x4f1   :  { %v688_v58 = vpop.xlane.xlu2 %687 }
 0x4f2   :  { %v743_v59 = vadd.f32 %v688_v58, %v679_v22  ;;  %v732_v13 = vrot.slane %v688_v58, 1  ;;  %v733_v14 = vrot.slane %v688_v58, 2  ;;  %v734_v15 = vrot.slane %v688_v58, 3 }
 0x4f4   :  { %v764_v60 = vsel %vm817_vm9, %v743_v59, %v679_v22 }
 0x4f5   :  { %767 = vst.msk [vmem:[#allocation3] sm:$0xf] %vm64_vm0, %v764_v60 }
 0x509   :  { %v709_v61 = vpop.f32.mrf.mxu3 }
 0x50a   :  { %v712_v62 = vmax.f32 %v709_v61, 1e-35 }
 0x50c   :  { %859 = vlog2.f32 %v712_v62 }
 0x512   :  { %v860_v3 = vpop.eup %859 }
 0x513   :  { %v718_v12 = vmul.f32 0.6931472, %v860_v3 }
 0x515   :  { %v720_v8 = vrot.slane %v718_v12, 1  ;;  %v721_v9 = vrot.slane %v718_v12, 2  ;;  %v722_v11 = vrot.slane %v718_v12, 3  ;;  %v727_v16 = vadd.f32 %v718_v12, %v713_v4 }
 0x517   :  { %v728_v18 = vadd.f32 %v720_v8, %v714_v5  ;;  %v729_v19 = vadd.f32 %v721_v9, %v715_v6  ;;  %v730_v20 = vadd.f32 %v722_v11, %v716_v7  ;;  %v739_v25 = vsub.f32 %v727_v16, %v688_v58 }
 0x519   :  { %v740_v22 = vsub.f32 %v728_v18, %v732_v13  ;;  %v741_v23 = vsub.f32 %v729_v19, %v733_v14  ;;  %v742_v24 = vsub.f32 %v730_v20, %v734_v15 }
 0x51b   :  { %v756_v26 = vrot.slane %v740_v22, 7  ;;  %v758_v27 = vrot.slane %v741_v23, 6  ;;  %v760_v29 = vrot.slane %v742_v24, 5 }
 0x51d   :  { %v757_v17 = vsel %vm159_vm6, %v756_v26, %v739_v25 }
 0x51e   :  { %v759_v30 = vsel %vm162_vm7, %v758_v27, %v757_v17 }
 0x51f   :  { %v761_v31 = vsel %vm165_vm8, %v760_v29, %v759_v30 }
 0x520   :  { %v763_v32 = vsel %vm751_vm3, %v761_v31, %v678_v54 }
 0x521   :  { %765 = vst.msk [vmem:[#allocation2] sm:$0xf] %vm62_vm1, %v763_v32 }
 0x522 PF:  { %v861_v10 = vld [vmem:[%s1117_s5] ss:$0 sm:$0xff] }
 0x523   :  { %v781_v42 = vld [vmem:[#allocation3] sm:$0xf] }
 0x528   :  { %v771_v33 = vld [vmem:[#allocation2] sm:$0xf] }
 0x529   :  { %v776_v34 = vadd.f32 %v861_v10, %v771_v33 }
 0x52b   :  { %v778_v35 = vsel %vm62_vm1, %v776_v34, -inf }
 0x52c   :  { %779 = vmax.xlane.f32.xlu0 %v778_v35 }
 0x59f   :  { %v780_v36 = vpop.xlane.xlu0 %779 }
 0x5a0   :  { %v783_v37 = vsub.f32 %v776_v34, %v780_v36  ;;  %v782_v44 = vadd.f32 %v781_v42, %v780_v36 }
 0x5a2   :  { %v784_v38 = vmul.f32 1.442695, %v783_v37 }
 0x5a4   :  { %862 = vpow2.f32 %v784_v38 }
 0x5aa   :  { %v863_v39 = vpop.eup %862 }
 0x5ab   :  { %v786_v40 = vsel %vm62_vm1, %v863_v39, 0.0 }
 0x5ac   :  { %787 = vadd.xlane.f32.xlu0 %v786_v40 }
 0x61f   :  { %v788_v41 = vpop.xlane.xlu0 %787 }
 0x620   :  { %864 = vlog2.f32 %v788_v41 }
 0x626   :  { %v865_v43 = vpop.eup %864 }
 0x627   :  { %v790_v45 = vmul.f32 0.6931472, %v865_v43 }
 0x629   :  { %v791_v46 = vadd.f32 %v790_v45, %v782_v44 }
 0x62b   :  { %793 = vst.msk [vmem:[%s1118_s6] sm:$0xf] %vm64_vm0, %v791_v46 }
 0x62c   :  { %798 = vsyncpa [#allocation7], 1 }
 0x62d   :  { %799 = vsyncpa [#allocation9], 1 }

</bundles_post_ra>
